<compile_context>
chip_gen: v6e
topology: v6e:2x2x1
jax: 0.10.0
libtpu: 0.0.40
codegen_flags: <defaults>
</compile_context>

<pallas_src>
import functools
import math

import jax
import jax.numpy as jnp
from jax.experimental import pallas as pl
from jax.experimental.pallas import tpu as pltpu


# ----------------------------- kernel -------------------------------------- #

def _pe_add_kernel(scale_ref, x_ref, pe_ref, o_ref, *, batch: int):
    # scale_ref: SMEM (1,) f32
    # x_ref:  VMEM (ts, B*D)         (x dtype)
    # pe_ref: VMEM (ts, D)           (f32, or x dtype if sub-32-bit)
    # o_ref:  VMEM (ts, B*D)         (x dtype)
    scale = scale_ref[0]
    x = x_ref[...].astype(jnp.float32)
    pe = pe_ref[...].astype(jnp.float32)
    if batch > 1:
        # Replicate pe across the batch along the lane axis (in-VMEM, no
        # extra HBM traffic): lanes are laid out as [b0: d0..dD-1, b1: ...].
        pe = jnp.tile(pe, (1, batch))
    o_ref[...] = (x + scale * pe).astype(o_ref.dtype)


# ----------------------------- helpers ------------------------------------- #

def make_positional_encoding_table(d_model: int, max_len: int = 1000) -> jnp.ndarray:
    """Sinusoidal PE buffer exactly like the PyTorch __init__ (even d_model)."""
    position = jnp.arange(0, max_len, dtype=jnp.float32)[:, None]            # (max_len, 1)
    div_term = jnp.exp(
        jnp.arange(0, d_model, 2, dtype=jnp.float32) * (-math.log(10000.0) / d_model)
    )                                                                         # (d/2,)
    ang = position * div_term                                                 # (max_len, d/2)
    pe = jnp.zeros((max_len, d_model), dtype=jnp.float32)
    pe = pe.at[:, 0::2].set(jnp.sin(ang))
    pe = pe.at[:, 1::2].set(jnp.cos(ang)[:, : d_model // 2])
    # torch: pe.unsqueeze(0).transpose(0, 1) -> (max_len, 1, d_model)
    return pe[:, None, :]


def _round_up(x: int, m: int) -> int:
    return -(-x // m) * m


def _choose_seq_tile(seq_len: int,
                     padded_bytes_per_row: int,
                     budget_bytes: int = 24 << 20,
                     min_steps: int = 4) -> int:
    """Rows per grid step.

    `padded_bytes_per_row` is the VMEM footprint per sequence row summed over
    all buffers (x-in + pe-in + out), with lanes padded to multiples of 128
    and counted twice for double-buffering.  The budget (~24 MiB) keeps the
    double-buffered working set comfortably inside v7x's 64 MiB physical VMEM
    while being large enough to amortize the ~0.35 us per-step overhead on
    v5e/v6e/v7x.
    """
    if seq_len <= 8:
        return seq_len
    ts = max(8, budget_bytes // max(padded_bytes_per_row, 1))
    ts -= ts % 8
    # Keep at least `min_steps` grid steps when the sequence is long enough
    # (megacore sharding on v7x + DMA/compute pipelining).
    cap = _round_up(max(-(-seq_len // min_steps), 8), 8)
    ts = min(ts, cap, seq_len)
    if ts < seq_len and ts % 8:
        ts -= ts % 8
    return max(ts, 8)


# ----------------------------- wrapper ------------------------------------- #

def positional_encoding_forward(x: jnp.ndarray,
                                pe: jnp.ndarray,
                                scale: jnp.ndarray,
                                *,
                                donate_x: bool = False) -> jnp.ndarray:
    """x: (S, B, D); pe: (max_len, 1, D) f32; scale: (1,) f32."""
    S, B, D = x.shape
    scale = jnp.asarray(scale, dtype=jnp.float32).reshape((1,))

    # Lane-dense layout: flatten (B, D) into the lane axis (free reshape).
    x2 = x.reshape(S, B * D)

    # pe stays (S, D) in HBM; store it at x's width when x is sub-32-bit to
    # halve its read traffic (upcast to f32 happens in-kernel).
    xsz = jnp.dtype(x.dtype).itemsize
    pe_dtype = x.dtype if xsz < 4 else jnp.float32
    pe_s = pe[:S].reshape(S, D).astype(pe_dtype)
    pesz = jnp.dtype(pe_dtype).itemsize

    # Padded-VMEM accounting (lanes rounded to 128, x-in + out + pe-in,
    # x2 for double buffering).
    lanes_x = _round_up(B * D, 128)
    lanes_pe = _round_up(D, 128)
    padded_bytes_per_row = 2 * (2 * lanes_x * xsz + lanes_pe * pesz)
    ts = _choose_seq_tile(S, padded_bytes_per_row)

    kernel = functools.partial(_pe_add_kernel, batch=B)
    extra = {"input_output_aliases": {1: 0}} if donate_x else {}

    out2 = pl.pallas_call(
        kernel,
        out_shape=jax.ShapeDtypeStruct((S, B * D), x.dtype),
        grid=(pl.cdiv(S, ts),),
        in_specs=[
            pl.BlockSpec(memory_space=pltpu.MemorySpace.SMEM),   # scale
            pl.BlockSpec((ts, B * D), lambda i: (i, 0)),         # x tile
            pl.BlockSpec((ts, D), lambda i: (i, 0)),             # pe tile (S, D)
        ],
        out_specs=pl.BlockSpec((ts, B * D), lambda i: (i, 0)),
        compiler_params=pltpu.CompilerParams(
            dimension_semantics=("parallel",),
            vmem_limit_bytes=48 << 20,
        ),
        **extra,
    )(scale, x2, pe_s)
    return out2.reshape(S, B, D)


# ------------------------------- demo --------------------------------------- #

if __name__ == "__main__":
    key = jax.random.PRNGKey(0)
    k1, k2, k3 = jax.random.split(key, 3)
    max_len = 1000

    # Deterministic parameter init, like nn.Parameter(torch.ones(1)).
    scale = jnp.ones((1,), dtype=jnp.float32)

    # --- small d_model (lane-narrow path, in-kernel batch replication) ---
    seq_len, batch, d_model = 8, 2, 32
    x = jax.random.normal(k1, (seq_len, batch, d_model), dtype=jnp.float32)
    pe = make_positional_encoding_table(d_model, max_len)
    out = positional_encoding_forward(x, pe, scale)
    jax.block_until_ready(out)
    ref = x + scale[0] * pe[:seq_len]
    assert out.shape == x.shape
    assert jnp.allclose(out, ref, atol=1e-5), "mismatch vs reference (d_model=32)"

    # --- 128-aligned d_model (fully lane-dense flattened path) ---
    seq_len2, batch2, d_model2 = 16, 2, 128
    x_b = jax.random.normal(k2, (seq_len2, batch2, d_model2), dtype=jnp.float32)
    pe_b = make_positional_encoding_table(d_model2, max_len)
    out_b = positional_encoding_forward(x_b, pe_b, scale)
    jax.block_until_ready(out_b)
    ref_b = x_b + scale[0] * pe_b[:seq_len2]
    assert out_b.shape == x_b.shape
    assert jnp.allclose(out_b, ref_b, atol=1e-5), "mismatch vs reference (d_model=128)"

    # --- bf16 input (pe read at bf16 width, f32 accumulate, bf16 store) ---
    x_c = jax.random.normal(k3, (seq_len2, batch2, d_model2), dtype=jnp.float32
                            ).astype(jnp.bfloat16)
    out_c = positional_encoding_forward(x_c, pe_b, scale)
    jax.block_until_ready(out_c)
    pe_q = pe_b[:seq_len2].astype(jnp.bfloat16).astype(jnp.float32)
    ref_c = (x_c.astype(jnp.float32) + scale[0] * pe_q).astype(jnp.bfloat16)
    assert out_c.shape == x_c.shape
    assert jnp.allclose(out_c.astype(jnp.float32), ref_c.astype(jnp.float32),
                        atol=2e-2), "mismatch vs reference (bf16)"

    print("KERNEL_OK")
</pallas_src>

<mosaic_0001>
module attributes {stable_mosaic.version = 11 : i64} {
  func.func @_pe_add_kernel(%arg0: i32, %arg1: memref<1xf32, #tpu.memory_space<smem>>, %arg2: memref<8x64xf32, #tpu.memory_space<vmem>>, %arg3: memref<8x32xf32, #tpu.memory_space<vmem>>, %arg4: memref<8x64xf32, #tpu.memory_space<vmem>>) attributes {dimension_semantics = [#tpu.dimension_semantics<parallel>], iteration_bounds = array<i64: 1>, scalar_prefetch = 0 : i64, scratch_operands = 0 : i64, tpu.core_type = #tpu.core_type<tc>, window_params = [{transform_indices = @transform_0, window_bounds = array<i64: 1>}, {transform_indices = @transform_1, window_bounds = array<i64: 8, 64>}, {transform_indices = @transform_2, window_bounds = array<i64: 8, 32>}, {transform_indices = @transform_3, window_bounds = array<i64: 8, 64>}]} {
    %c0 = arith.constant 0 : index
    %0 = memref.load %arg1[%c0] : memref<1xf32, #tpu.memory_space<smem>>
    %c0_0 = arith.constant 0 : index
    %c0_1 = arith.constant 0 : index
    %1 = vector.load %arg2[%c0_0, %c0_1] : memref<8x64xf32, #tpu.memory_space<vmem>>, vector<8x64xf32>
    %c0_2 = arith.constant 0 : index
    %c0_3 = arith.constant 0 : index
    %2 = vector.load %arg3[%c0_2, %c0_3] : memref<8x32xf32, #tpu.memory_space<vmem>>, vector<8x32xf32>
    %3 = tpu.concatenate %2, %2 in 1 : vector<8x32xf32>, vector<8x32xf32> -> vector<8x64xf32>
    %4 = vector.broadcast %0 : f32 to vector<8x64xf32>
    %5 = arith.mulf %4, %3 : vector<8x64xf32>
    %6 = arith.addf %1, %5 : vector<8x64xf32>
    %c0_4 = arith.constant 0 : index
    %c0_5 = arith.constant 0 : index
    %7 = vector.load %arg4[%c0_4, %c0_5] : memref<8x64xf32, #tpu.memory_space<vmem>>, vector<8x64xf32>
    tpu.vector_store %arg4[%c0_4, %c0_5], %6 {strides = array<i32>} : memref<8x64xf32, #tpu.memory_space<vmem>>, vector<8x64xf32>,
    return
  }
  func.func @transform_0(%arg0: i32) -> i32 {
    %c0_i32 = arith.constant 0 : i32
    %c0_i32_0 = arith.constant 0 : i32
    return %c0_i32 : i32
  }
  func.func @transform_1(%arg0: i32) -> (i32, i32) {
    %c0_i32 = arith.constant 0 : i32
    %c0_i32_0 = arith.constant 0 : i32
    return %arg0, %c0_i32 : i32, i32
  }
  func.func @transform_2(%arg0: i32) -> (i32, i32) {
    %c0_i32 = arith.constant 0 : i32
    %c0_i32_0 = arith.constant 0 : i32
    return %arg0, %c0_i32 : i32, i32
  }
  func.func @transform_3(%arg0: i32) -> (i32, i32) {
    %c0_i32 = arith.constant 0 : i32
    %c0_i32_0 = arith.constant 0 : i32
    return %arg0, %c0_i32 : i32, i32
  }
}

</mosaic_0001>

<bundles_post_ra>
// kernel: tpu_custom_call.1
= control target key start
LH: loop header
LB: loop body
LE: loop exit
PB: predicated region body
PF: predicated region fallthrough
CT: control target
= control target key end

     0   :  { %9 = vsyncpa [#allocation4], 0  ;;  %s176_s0 = inlined_call_operand.<no memory space> [shape: f32[1], index: 0, kind: input, shape index: {}]   ;;  %s177_s1 = inlined_call_operand.hbm [shape: f32[8,64], index: 1, kind: input, shape index: {}]   ;;  %s178_s2 = inlined_call_operand.hbm [shape: f32[8,32], index: 2, kind: input, shape index: {}]   ;;  %s179_s3 = inlined_call_operand.hbm [shape: f32[8,64], index: 3, kind: output, shape index: {}]  }
   0x1   :  { %10 = vsyncpa [#allocation7], 0 }
   0x2   :  { %11 = vsyncpa [#allocation5], 0  ;;  %s140_s12 = smov [#allocation3]   ;;  %s141_s14 = smov [#allocation6]  }
   0x3   :  { %s20_s13 = sshll.u32 %s140_s12, 4  ;;  %s30_s15 = sshll.u32 %s141_s14, 4  ;;  %s21_s13 = int_to_ptr.vmem [resolvable:$true] %s20_s13  ;;  %s31_s15 = int_to_ptr.vmem [resolvable:$true] %s30_s15 }
   0x4   :  { %s82_s16 = scalar_lea.vmem %s21_s13, 128  ;;  %p87_p1 = scmp.lt.s32.totalorder %s21_s13, %s21_s13 }
   0x5   :  { %p83_p0 = scmp.ne.s32.totalorder %s21_s13, %s82_s16  ;;  %p88_p2 = scmp.lt.s32.totalorder %s82_s16, %s82_s16 }
   0x7   :  { %p89_p3 = por %p88_p2, %p87_p1 }
   0x9   :  { %p90_p4 = pnand %p89_p3, %p83_p0 }
   0xb   :  { %93 = shalt.err (!%p90_p4)
}
   0xc   :  { %23 = dma.hbm_to_vmem [thread:$0]  %s177_s1, 128, %s21_s13, [#allocation4]  }
   0xd   :  { %s102_s19 = scalar_lea.vmem %s31_s15, 128  ;;  %p107_p6 = scmp.lt.s32.totalorder %s31_s15, %s31_s15 }
   0xe   :  { %p103_p5 = scmp.ne.s32.totalorder %s31_s15, %s102_s19  ;;  %p108_p7 = scmp.lt.s32.totalorder %s102_s19, %s102_s19 }
  0x10   :  { %p109_p8 = por %p108_p7, %p107_p6 }
  0x12   :  { %p110_p9 = pnand %p109_p8, %p103_p5 }
  0x14   :  { %113 = shalt.err (!%p110_p9)
}
  0x15   :  { %33 = dma.hbm_to_vmem [thread:$0]  %s178_s2, 128, %s31_s15, [#allocation7]  }
  0x16   :  { %134 = dma.done.wait [#allocation4], 128  }
  0x17   :  { %135 = vsyncadd [#allocation4], 4294967168 }
  0x18   :  { %136 = dma.done.wait [#allocation7], 128  }
  0x19   :  { %137 = vsyncadd [#allocation7], 4294967168  ;;  %v42_v0 = vld [vmem:[#allocation6] sm:$0xff]  ;;  %s142_s22 = smov 32   ;;  %vm47_vm0 = vcmask 261120   ;;  %v49_v1 = vstv %s176_s0  ;;  %v41_v3 = vld [vmem:[#allocation3] sm:$0xff] }
  0x1a   :  { %44 = vrot.lane.b32.xlu0 %v42_v0, %s142_s22  ;;  %s143_s24 = smov [#allocation8]   ;;  %vm52_vm1 = vcmask 523264  }
  0x1b   :  { %s60_s25 = sshll.u32 %s143_s24, 4  ;;  %s61_s25 = int_to_ptr.vmem [resolvable:$true] %s60_s25 }
  0x1c   :  { %s114_s2 = scalar_lea.vmem %s61_s25, 128  ;;  %p119_p11 = scmp.lt.s32.totalorder %s61_s25, %s61_s25 }
  0x1d   :  { %p115_p10 = scmp.ne.s32.totalorder %s61_s25, %s114_s2  ;;  %p120_p12 = scmp.lt.s32.totalorder %s114_s2, %s114_s2 }
  0x1f   :  { %p121_p13 = por %p120_p12, %p119_p11 }
  0x21   :  { %p122_p0 = pnand %p121_p13, %p115_p10 }
  0x8c   :  { %v45_v2 = vpop.permute.xlu0 %44 }
  0x8d   :  { %v48_v4 = vsel %vm47_vm0, %v42_v0, %v45_v2 }
  0x8e   :  { %v50_v5 = vmul.f32 %v49_v1, %v48_v4 }
  0x90   :  { %v51_v6 = vadd.f32 %v50_v5, %v41_v3 }
  0x92   :  { %53 = vst.msk [vmem:[#allocation8] sm:$0xff] %vm52_vm1, %v51_v6 }
  0x93   :  { %125 = shalt.err (!%p122_p0)
}
  0x94   :  { %63 = dma.vmem_to_hbm [thread:$0]  %s61_s25, 128, %s179_s3, [#allocation5]  }
  0x95   :  { %138 = dma.done.wait [#allocation5], 128  }
  0x96   :  { %139 = vsyncadd [#allocation5], 4294967168 }
  0x97   :  { %67 = vsyncpa [#allocation4], 1 }
  0x98   :  { %68 = vsyncpa [#allocation7], 1 }
  0x99   :  { %69 = vsyncpa [#allocation5], 1 }

</bundles_post_ra>
